<compile_context>
chip_gen: v6e
topology: v6e:2x2x1
jax: 0.10.0
libtpu: 0.0.40
codegen_flags: <defaults>
</compile_context>

<pallas_src>
import jax
import jax.numpy as jnp
from jax.experimental import pallas as pl
from jax.experimental.pallas import tpu as pltpu

IN_SHAPE = (2, 1, 1, 4)   # rank-4 input that broadcasts to OUT_SHAPE
OUT_SHAPE = (2, 3, 4, 4)  # torch .expand(2, 3, 4, 4)

# Flattened layouts used for the actual kernel launch.
IN_2D = (2, 4)            # (batch, w)
OUT_3D = (2, 12, 4)       # (batch, c*h, w) — row-major, reshapes to OUT_SHAPE
REPEATS = 12              # 3 (c) * 4 (h) copies of the length-4 w-row per batch


def expand_kernel(x_ref, o_ref):
    # x_ref: (2, 4) in VMEM; o_ref: (2, 12, 4) in VMEM.
    # out[b, k, w] = in[b, w]   ==   out[b, c, h, w] = in[b, 0, 0, w]
    x = x_ref[...]                                   # one vld
    o_ref[...] = jnp.broadcast_to(x[:, None, :], OUT_3D)  # sublane broadcast + vst


def expand(x):
    assert x.shape == IN_SHAPE and x.dtype == jnp.float32
    # Flatten outside the kernel (free reshapes in XLA), run one grid-less
    # Pallas invocation, reshape back to the rank-4 result.
    x2d = x.reshape(IN_2D)
    out3d = pl.pallas_call(
        expand_kernel,
        out_shape=jax.ShapeDtypeStruct(OUT_3D, jnp.float32),
        in_specs=[pl.BlockSpec(IN_2D, lambda: (0, 0),
                               memory_space=pltpu.VMEM)],
        out_specs=pl.BlockSpec(OUT_3D, lambda: (0, 0, 0),
                               memory_space=pltpu.VMEM),
        grid=(),
        cost_estimate=pl.CostEstimate(
            flops=0, transcendentals=0, bytes_accessed=416),
    )(x2d)
    return out3d.reshape(OUT_SHAPE)


if __name__ == "__main__":
    key = jax.random.PRNGKey(0)
    x = jax.random.normal(key, IN_SHAPE, dtype=jnp.float32)

    out = expand(x)
    out = jax.block_until_ready(out)

    # Reference check against plain-JAX broadcast (== torch.expand semantics).
    ref = jnp.broadcast_to(x, OUT_SHAPE)
    assert out.shape == OUT_SHAPE
    assert out.dtype == jnp.float32
    assert jnp.array_equal(out, ref)

    print("KERNEL_OK")
</pallas_src>

<mosaic_0001>
module attributes {stable_mosaic.version = 11 : i64} {
  func.func @expand_kernel(%arg0: memref<2x4xf32, #tpu.memory_space<vmem>>, %arg1: memref<2x12x4xf32, #tpu.memory_space<vmem>>) attributes {dimension_semantics = [], scalar_prefetch = 0 : i64, scratch_operands = 0 : i64, tpu.core_type = #tpu.core_type<tc>} {
    %c0 = arith.constant 0 : index
    %c0_0 = arith.constant 0 : index
    %0 = vector.load %arg0[%c0, %c0_0] : memref<2x4xf32, #tpu.memory_space<vmem>>, vector<2x4xf32>
    %1 = vector.shape_cast %0 : vector<2x4xf32> to vector<2x1x4xf32>
    %2 = vector.shape_cast %1 : vector<2x1x4xf32> to vector<2x1x4xf32>
    %3 = vector.broadcast %2 : vector<2x1x4xf32> to vector<2x12x4xf32>
    %c0_1 = arith.constant 0 : index
    %c0_2 = arith.constant 0 : index
    %c0_3 = arith.constant 0 : index
    %4 = vector.load %arg1[%c0_1, %c0_2, %c0_3] : memref<2x12x4xf32, #tpu.memory_space<vmem>>, vector<2x12x4xf32>
    tpu.vector_store %arg1[%c0_1, %c0_2, %c0_3], %3 {strides = array<i32>} : memref<2x12x4xf32, #tpu.memory_space<vmem>>, vector<2x12x4xf32>,
    return
  }
}

</mosaic_0001>

<bundles_post_ra>
// kernel: tpu_custom_call.1
= control target key start
LH: loop header
LB: loop body
LE: loop exit
PB: predicated region body
PF: predicated region fallthrough
CT: control target
= control target key end

     0   :  { %6 = vsyncpa [#allocation3], 0  ;;  %s90_s6 = smov [#allocation2]   ;;  %s117_s0 = inlined_call_operand.hbm [shape: f32[2,4], index: 0, kind: input, shape index: {}]   ;;  %s118_s1 = inlined_call_operand.vmem [shape: f32[2,12,4], index: 1, kind: output, shape index: {}]  }
   0x1   :  { %s13_s7 = sshll.u32 %s90_s6, 4  ;;  %s14_s7 = int_to_ptr.vmem [resolvable:$true] %s13_s7 }
   0x2   :  { %s76_s8 = scalar_lea.vmem %s14_s7, 32  ;;  %p81_p1 = scmp.lt.s32.totalorder %s14_s7, %s14_s7 }
   0x3   :  { %p77_p0 = scmp.ne.s32.totalorder %s14_s7, %s76_s8  ;;  %p82_p2 = scmp.lt.s32.totalorder %s76_s8, %s76_s8 }
   0x5   :  { %p83_p3 = por %p82_p2, %p81_p1 }
   0x7   :  { %p84_p4 = pnand %p83_p3, %p77_p0 }
   0x9   :  { %87 = shalt.err (!%p84_p4)
}
   0xa   :  { %16 = dma.hbm_to_vmem [thread:$0]  %s117_s0, 32, %s14_s7, [#allocation3]  }
   0xb   :  { %88 = dma.done.wait [#allocation3], 32  }
   0xc   :  { %89 = vsyncadd [#allocation3], 4294967264  ;;  %v33_v0 = vlaneseq  ;;  %v91_v1 = vmov 1966171168   ;;  %vm54_vm0 = vcmask 31744   ;;  %vm56_vm1 = vcmask 27648  }
   0xd   :  { %v31_v2 = vunpack.c.l.s4 %v91_v1  ;;  %v65_v7 = vld.sshfl [vmem:[#allocation2] sm:$0x11 pattern:$0x75316420] }
   0xe   :  { %v34_v3 = vshrl.u32 %v33_v0, 7  ;;  %v29_v9 = vcombine.high %v65_v7, %v65_v7 }
   0xf   :  { %v32_v4 = vunpack.c.0.s8 %v31_v2 }
  0x10   :  { %v46_v6 = vsub.s32 0, %v34_v3 }
  0x11   :  { %v35_v5 = vsub.s32 %v32_v4, %v34_v3 }
  0x13   :  { %v36_v8 = vrot.slane %v65_v7, %v35_v5  ;;  %v43_v11 = vrot.slane %v29_v9, %v35_v5 }
  0x15   :  { %v47_v10 = vrot.slane %v36_v8, %v46_v6  ;;  %v51_v12 = vrot.slane %v43_v11, %v46_v6 }
  0x17   :  { %55 = vst.msk [vmem:[%s118_s1] sm:$0xff] %vm54_vm0, %v47_v10  ;;  %58 = vst.msk [vmem:[%s118_s1 + $0x10] sm:$0xff] %vm54_vm0, %v51_v12 }
  0x18   :  { %57 = vst.msk [vmem:[%s118_s1 + $0x8] sm:$0xf] %vm56_vm1, %v47_v10  ;;  %59 = vst.msk [vmem:[%s118_s1 + $0x18] sm:$0xf] %vm56_vm1, %v51_v12 }
  0x19   :  { %64 = vsyncpa [#allocation3], 1 }

</bundles_post_ra>
